<compile_context>
chip_gen: v5e
topology: v5e:2x2
jax: 0.10.0
libtpu: 0.0.40
codegen_flags: <defaults>
</compile_context>

<pallas_src>
import jax
import jax.numpy as jnp
from jax.experimental import pallas as pl
from jax.experimental.pallas import tpu as pltpu


def _round_up(x, m):
    return ((x + m - 1) // m) * m


def _mlp_kernel(x_ref, w1_ref, b1_ref, w2_ref, b2_ref, w3_ref, o_ref):
    # x_ref: (tm, in_feat) bf16 row tile; weights fully resident in VMEM (bf16).
    x = x_ref[...]

    # Linear(in_feat -> 128) + ReLU  (bf16 operands, f32 accumulate)
    h1 = jnp.dot(x, w1_ref[...], preferred_element_type=jnp.float32) + b1_ref[...]
    h1 = jnp.maximum(h1, 0.0).astype(jnp.bfloat16)

    # Linear(128 -> 128) + ReLU
    h2 = jnp.dot(h1, w2_ref[...], preferred_element_type=jnp.float32) + b2_ref[...]
    h2 = jnp.maximum(h2, 0.0).astype(jnp.bfloat16)

    # Linear(128 -> out_pad), no bias -- lane-dense (multiple-of-128) store
    o_ref[...] = jnp.dot(h2, w3_ref[...], preferred_element_type=jnp.float32)


def pre_processing_forward(x, params, *, tm=512):
    """x: (..., in_feat) float-castable array. Returns (..., out_feat) float32."""
    w1, b1, w2, b2, w3 = params
    in_feat = w1.shape[0]
    hidden = w1.shape[1]
    out_feat = w3.shape[1]

    lead_shape = x.shape[:-1]
    xf = x.reshape(-1, in_feat).astype(jnp.float32)  # mirrors x.float()
    n_rows = xf.shape[0]

    # Row tile: multiple of 8 sublanes; don't exceed the (padded) row count.
    tm = max(8, _round_up(min(tm, _round_up(n_rows, 8)), 8))
    n_rows_pad = _round_up(n_rows, tm)
    if n_rows_pad != n_rows:
        xf = jnp.pad(xf, ((0, n_rows_pad - n_rows), (0, 0)))

    # Lane-dense output: pad W3's output dim to a multiple of 128 with zeros.
    out_pad = _round_up(out_feat, 128)
    w3p = w3
    if out_pad != out_feat:
        w3p = jnp.pad(w3, ((0, 0), (0, out_pad - out_feat)))

    # bf16 MXU operands (cast once here, not per grid step); f32 accumulate in-kernel.
    xb = xf.astype(jnp.bfloat16)
    w1b = w1.astype(jnp.bfloat16)
    w2b = w2.astype(jnp.bfloat16)
    w3b = w3p.astype(jnp.bfloat16)
    b1f = b1.astype(jnp.float32)
    b2f = b2.astype(jnp.float32)

    grid = (pl.cdiv(n_rows_pad, tm),)

    out = pl.pallas_call(
        _mlp_kernel,
        out_shape=jax.ShapeDtypeStruct((n_rows_pad, out_pad), jnp.float32),
        grid_spec=pltpu.PrefetchScalarGridSpec(
            num_scalar_prefetch=0,
            grid=grid,
            in_specs=[
                pl.BlockSpec((tm, in_feat), lambda i: (i, 0)),      # x row tile
                pl.BlockSpec((in_feat, hidden), lambda i: (0, 0)),  # W1 (full)
                pl.BlockSpec((1, hidden), lambda i: (0, 0)),        # b1
                pl.BlockSpec((hidden, hidden), lambda i: (0, 0)),   # W2 (full)
                pl.BlockSpec((1, hidden), lambda i: (0, 0)),        # b2
                pl.BlockSpec((hidden, out_pad), lambda i: (0, 0)),  # W3 (padded, full)
            ],
            out_specs=pl.BlockSpec((tm, out_pad), lambda i: (i, 0)),
        ),
        compiler_params=pltpu.CompilerParams(
            dimension_semantics=("parallel",),
        ),
    )(xb, w1b, b1f, w2b, b2f, w3b)

    out = out[:n_rows, :out_feat]
    return out.reshape(*lead_shape, out_feat)


def init_params(key, in_feat, out_feat, hidden=128):
    """Deterministic synthetic parameter init (shapes match the nn.Module)."""
    k1, k2, k3, k4, k5 = jax.random.split(key, 5)
    # Stored as (in, out) so the kernel computes x @ W directly
    # (PyTorch stores (out, in) and computes x @ W.T -- same math).
    w1 = jax.random.normal(k1, (in_feat, hidden), jnp.float32) * 0.05
    b1 = jax.random.normal(k2, (1, hidden), jnp.float32) * 0.05
    w2 = jax.random.normal(k3, (hidden, hidden), jnp.float32) * 0.05
    b2 = jax.random.normal(k4, (1, hidden), jnp.float32) * 0.05
    w3 = jax.random.normal(k5, (hidden, out_feat), jnp.float32) * 0.05
    return (w1, b1, w2, b2, w3)


def reference_forward_f32(x, params):
    """Full-f32 reference (exact PyTorch-eval semantics)."""
    w1, b1, w2, b2, w3 = params
    xf = x.astype(jnp.float32)
    h1 = jnp.maximum(xf @ w1 + b1[0], 0.0)
    h2 = jnp.maximum(h1 @ w2 + b2[0], 0.0)
    return h2 @ w3


def reference_forward_bf16(x, params):
    """Reference mirroring the kernel's bf16-operand / f32-accumulate path."""
    w1, b1, w2, b2, w3 = params
    xb = x.astype(jnp.float32).astype(jnp.bfloat16)
    h1 = jnp.dot(xb, w1.astype(jnp.bfloat16),
                 preferred_element_type=jnp.float32) + b1[0]
    h1 = jnp.maximum(h1, 0.0).astype(jnp.bfloat16)
    h2 = jnp.dot(h1, w2.astype(jnp.bfloat16),
                 preferred_element_type=jnp.float32) + b2[0]
    h2 = jnp.maximum(h2, 0.0).astype(jnp.bfloat16)
    return jnp.dot(h2, w3.astype(jnp.bfloat16),
                   preferred_element_type=jnp.float32)


if __name__ == "__main__":
    key = jax.random.PRNGKey(0)
    in_feat, out_feat, hidden = 32, 64, 128
    batch, nodes = 2, 200  # 400 rows: not a tile multiple -> exercises padding

    kx, kp = jax.random.split(key)
    x = jax.random.normal(kx, (batch, nodes, in_feat), jnp.float32)
    params = init_params(kp, in_feat, out_feat, hidden)

    out = pre_processing_forward(x, params)
    out = jax.block_until_ready(out)
    assert out.shape == (batch, nodes, out_feat)

    # Tight check vs. a reference that mirrors the kernel's bf16/f32 compute path.
    ref_bf16 = reference_forward_bf16(x, params)
    assert jnp.allclose(out, ref_bf16, atol=1e-4, rtol=1e-4), "mismatch vs bf16 reference"

    # Looser semantic check vs. the full-f32 PyTorch-equivalent reference
    # (difference is bf16 operand rounding only).
    ref_f32 = reference_forward_f32(x, params)
    assert jnp.allclose(out, ref_f32, atol=5e-2, rtol=5e-2), "mismatch vs f32 reference"

    print("KERNEL_OK")
</pallas_src>

<mosaic_0001>
module attributes {stable_mosaic.version = 11 : i64} {
  func.func @_mlp_kernel(%arg0: i32, %arg1: memref<400x32xbf16, #tpu.memory_space<vmem>>, %arg2: memref<32x128xbf16, #tpu.memory_space<vmem>>, %arg3: memref<1x128xf32, #tpu.memory_space<vmem>>, %arg4: memref<128x128xbf16, #tpu.memory_space<vmem>>, %arg5: memref<1x128xf32, #tpu.memory_space<vmem>>, %arg6: memref<128x128xbf16, #tpu.memory_space<vmem>>, %arg7: memref<400x128xf32, #tpu.memory_space<vmem>>) attributes {dimension_semantics = [#tpu.dimension_semantics<parallel>], iteration_bounds = array<i64: 1>, scalar_prefetch = 0 : i64, scratch_operands = 0 : i64, tpu.core_type = #tpu.core_type<tc>, window_params = [{transform_indices = @transform_0, window_bounds = array<i64: 400, 32>}, {pipeline_mode = #tpu.pipeline_mode<synchronous>, transform_indices = @transform_1, window_bounds = array<i64: 32, 128>}, {pipeline_mode = #tpu.pipeline_mode<synchronous>, transform_indices = @transform_2, window_bounds = array<i64: 1, 128>}, {pipeline_mode = #tpu.pipeline_mode<synchronous>, transform_indices = @transform_3, window_bounds = array<i64: 128, 128>}, {pipeline_mode = #tpu.pipeline_mode<synchronous>, transform_indices = @transform_4, window_bounds = array<i64: 1, 128>}, {pipeline_mode = #tpu.pipeline_mode<synchronous>, transform_indices = @transform_5, window_bounds = array<i64: 128, 128>}, {transform_indices = @transform_6, window_bounds = array<i64: 400, 128>}]} {
    %c0 = arith.constant 0 : index
    %c0_0 = arith.constant 0 : index
    %0 = vector.load %arg1[%c0, %c0_0] : memref<400x32xbf16, #tpu.memory_space<vmem>>, vector<400x32xbf16>
    %c0_1 = arith.constant 0 : index
    %c0_2 = arith.constant 0 : index
    %1 = vector.load %arg2[%c0_1, %c0_2] : memref<32x128xbf16, #tpu.memory_space<vmem>>, vector<32x128xbf16>
    %cst = arith.constant dense<0.000000e+00> : vector<400x128xf32>
    %2 = tpu.matmul %0, %1, %cst {dimension_numbers = #tpu.dot_dimension_numbers<[1], [0], [0], [1], [0, 0, 1, 1], [], []>} : vector<400x32xbf16>, vector<32x128xbf16>, vector<400x128xf32> -> vector<400x128xf32>
    %c0_3 = arith.constant 0 : index
    %c0_4 = arith.constant 0 : index
    %3 = vector.load %arg3[%c0_3, %c0_4] : memref<1x128xf32, #tpu.memory_space<vmem>>, vector<1x128xf32>
    %4 = vector.broadcast %3 : vector<1x128xf32> to vector<400x128xf32>
    %5 = arith.addf %2, %4 : vector<400x128xf32>
    %cst_5 = arith.constant 0.000000e+00 : f32
    %6 = vector.broadcast %cst_5 : f32 to vector<400x128xf32>
    %7 = arith.maximumf %5, %6 : vector<400x128xf32>
    %8 = arith.truncf %7 : vector<400x128xf32> to vector<400x128xbf16>
    %c0_6 = arith.constant 0 : index
    %c0_7 = arith.constant 0 : index
    %9 = vector.load %arg4[%c0_6, %c0_7] : memref<128x128xbf16, #tpu.memory_space<vmem>>, vector<128x128xbf16>
    %cst_8 = arith.constant dense<0.000000e+00> : vector<400x128xf32>
    %10 = tpu.matmul %8, %9, %cst_8 {dimension_numbers = #tpu.dot_dimension_numbers<[1], [0], [0], [1], [0, 0, 1, 1], [], []>} : vector<400x128xbf16>, vector<128x128xbf16>, vector<400x128xf32> -> vector<400x128xf32>
    %c0_9 = arith.constant 0 : index
    %c0_10 = arith.constant 0 : index
    %11 = vector.load %arg5[%c0_9, %c0_10] : memref<1x128xf32, #tpu.memory_space<vmem>>, vector<1x128xf32>
    %12 = vector.broadcast %11 : vector<1x128xf32> to vector<400x128xf32>
    %13 = arith.addf %10, %12 : vector<400x128xf32>
    %cst_11 = arith.constant 0.000000e+00 : f32
    %14 = vector.broadcast %cst_11 : f32 to vector<400x128xf32>
    %15 = arith.maximumf %13, %14 : vector<400x128xf32>
    %16 = arith.truncf %15 : vector<400x128xf32> to vector<400x128xbf16>
    %c0_12 = arith.constant 0 : index
    %c0_13 = arith.constant 0 : index
    %17 = vector.load %arg6[%c0_12, %c0_13] : memref<128x128xbf16, #tpu.memory_space<vmem>>, vector<128x128xbf16>
    %cst_14 = arith.constant dense<0.000000e+00> : vector<400x128xf32>
    %18 = tpu.matmul %16, %17, %cst_14 {dimension_numbers = #tpu.dot_dimension_numbers<[1], [0], [0], [1], [0, 0, 1, 1], [], []>} : vector<400x128xbf16>, vector<128x128xbf16>, vector<400x128xf32> -> vector<400x128xf32>
    %c0_15 = arith.constant 0 : index
    %c0_16 = arith.constant 0 : index
    %19 = vector.load %arg7[%c0_15, %c0_16] : memref<400x128xf32, #tpu.memory_space<vmem>>, vector<400x128xf32>
    tpu.vector_store %arg7[%c0_15, %c0_16], %18 {strides = array<i32>} : memref<400x128xf32, #tpu.memory_space<vmem>>, vector<400x128xf32>,
    return
  }
  func.func @transform_0(%arg0: i32) -> (i32, i32) {
    %c0_i32 = arith.constant 0 : i32
    %c0_i32_0 = arith.constant 0 : i32
    return %arg0, %c0_i32 : i32, i32
  }
  func.func @transform_1(%arg0: i32) -> (i32, i32) {
    %c0_i32 = arith.constant 0 : i32
    %c0_i32_0 = arith.constant 0 : i32
    %c0_i32_1 = arith.constant 0 : i32
    return %c0_i32, %c0_i32_0 : i32, i32
  }
  func.func @transform_2(%arg0: i32) -> (i32, i32) {
    %c0_i32 = arith.constant 0 : i32
    %c0_i32_0 = arith.constant 0 : i32
    %c0_i32_1 = arith.constant 0 : i32
    return %c0_i32, %c0_i32_0 : i32, i32
  }
  func.func @transform_3(%arg0: i32) -> (i32, i32) {
    %c0_i32 = arith.constant 0 : i32
    %c0_i32_0 = arith.constant 0 : i32
    %c0_i32_1 = arith.constant 0 : i32
    return %c0_i32, %c0_i32_0 : i32, i32
  }
  func.func @transform_4(%arg0: i32) -> (i32, i32) {
    %c0_i32 = arith.constant 0 : i32
    %c0_i32_0 = arith.constant 0 : i32
    %c0_i32_1 = arith.constant 0 : i32
    return %c0_i32, %c0_i32_0 : i32, i32
  }
  func.func @transform_5(%arg0: i32) -> (i32, i32) {
    %c0_i32 = arith.constant 0 : i32
    %c0_i32_0 = arith.constant 0 : i32
    %c0_i32_1 = arith.constant 0 : i32
    return %c0_i32, %c0_i32_0 : i32, i32
  }
  func.func @transform_6(%arg0: i32) -> (i32, i32) {
    %c0_i32 = arith.constant 0 : i32
    %c0_i32_0 = arith.constant 0 : i32
    return %arg0, %c0_i32 : i32, i32
  }
}

</mosaic_0001>

<bundles_post_ra>
// kernel: tpu_custom_call.1
= control target key start
LH: loop header
LB: loop body
LE: loop exit
PB: predicated region body
PF: predicated region fallthrough
CT: control target
= control target key end

     0   :  { %s1666_s0 = inlined_call_operand.vmem [shape: bf16[400,32], index: 0, kind: input, shape index: {}]   ;;  %s1667_s1 = inlined_call_operand.vmem [shape: bf16[32,128], index: 1, kind: input, shape index: {}]   ;;  %s1668_s2 = inlined_call_operand.vmem [shape: f32[1,128], index: 2, kind: input, shape index: {}]   ;;  %s1669_s3 = inlined_call_operand.vmem [shape: bf16[128,128], index: 3, kind: input, shape index: {}]   ;;  %s1670_s4 = inlined_call_operand.vmem [shape: f32[1,128], index: 4, kind: input, shape index: {}]   ;;  %s1671_s5 = inlined_call_operand.vmem [shape: bf16[128,128], index: 5, kind: input, shape index: {}]   ;;  %s1672_s6 = inlined_call_operand.hbm [shape: f32[400,128], index: 6, kind: output, shape index: {}]  }
   0x1   :  { %v1271_v0 = vld [vmem:[%s1667_s1 + $0x8] sm:$0xff]  ;;  %v1270_v1 = vld [vmem:[%s1667_s1] sm:$0xff] }
   0x2   :  { %302 = vmatpush.bf16.msra.mxu0 %v1271_v0  ;;  %1288 = vmatpush.bf16.msra.mxu3 %v1271_v0 }
   0x3   :  { %11 = vsyncpa [#allocation3], 0  ;;  %v1245_v2 = vld [vmem:[%s1666_s0] sm:$0xff]  ;;  %vm220_vm0 = vcmask 261120   ;;  %v1246_v3 = vld [vmem:[%s1666_s0 + $0x8] sm:$0xff]  ;;  %s1036_s8 = sshll.u32 %s1672_s6, 4  ;;  %s1037_s8 = int_to_ptr.hbm [resolvable:$true] %s1036_s8 }
   0x4   :  { %v1247_v4 = vld [vmem:[%s1666_s0 + $0x10] sm:$0xff]  ;;  %v1248_v5 = vld [vmem:[%s1666_s0 + $0x18] sm:$0xff]  ;;  %v1249_v6 = vld [vmem:[%s1666_s0 + $0x20] sm:$0xff]  ;;  %s1338_s9 = smov 128   ;;  %s1339_s10 = smov 8  }
   0x5   :  { %v1279_v7 = vld [vmem:[%s1669_s3 + $0x38] sm:$0xff]  ;;  %v1250_v8 = vld [vmem:[%s1666_s0 + $0x28] sm:$0xff]  ;;  %v1278_v9 = vld [vmem:[%s1669_s3 + $0x30] sm:$0xff] }
   0x6   :  { %303 = vmatpush.bf16.msra.mxu0 %v1270_v1  ;;  %1289 = vmatpush.bf16.msra.mxu3 %v1270_v1  ;;  %v1277_v10 = vld [vmem:[%s1669_s3 + $0x28] sm:$0xff]  ;;  %v1276_v11 = vld [vmem:[%s1669_s3 + $0x20] sm:$0xff]  ;;  %v1275_v12 = vld [vmem:[%s1669_s3 + $0x18] sm:$0xff] }
   0x7   :  { %573 = vmatpush.bf16.msra.mxu1 %v1279_v7  ;;  %v1251_v13 = vld [vmem:[%s1666_s0 + $0x30] sm:$0xff]  ;;  %v1273_v15 = vld [vmem:[%s1669_s3 + $0x8] sm:$0xff]  ;;  %v1272_v16 = vld [vmem:[%s1669_s3] sm:$0xff] }
   0x8   :  { %v1274_v14 = vld [vmem:[%s1669_s3 + $0x10] sm:$0xff]  ;;  %v1252_v17 = vld [vmem:[%s1666_s0 + $0x38] sm:$0xff]  ;;  %v1253_v18 = vld [vmem:[%s1666_s0 + $0x40] sm:$0xff] }
   0x9   :  { %1156 = vmatmul.msk.bf16.vlgmr.msra.gmra.mxu0 %vm220_vm0, %v1245_v2  ;;  %v1443_v20 = vld [vmem:[%s1668_s2] ss:$0 sm:$0xff]  ;;  %v1254_v27 = vld [vmem:[%s1666_s0 + $0x48] sm:$0xff]  ;;  %v1255_v35 = vld [vmem:[%s1666_s0 + $0x50] sm:$0xff] }
   0xa   :  { %1290 = vmatpush.bf16.msrb.mxu3 %v1279_v7  ;;  %v1256_v43 = vld [vmem:[%s1666_s0 + $0x58] sm:$0xff]  ;;  %v1257_v51 = vld [vmem:[%s1666_s0 + $0x60] sm:$0xff]  ;;  %v1258_v59 = vld [vmem:[%s1666_s0 + $0x68] sm:$0xff] }
   0xb   :  { %574 = vmatpush.bf16.msra.mxu1 %v1278_v9  ;;  %v1287_v0 = vld [vmem:[%s1671_s5 + $0x38] sm:$0xff]  ;;  %v1490_v7 = vld [vmem:[%s1671_s5 + $0x28] sm:$0xff] }
   0xc   :  { %846 = vmatpush.bf16.msra.mxu2 %v1287_v0 }
   0xe   :  { %1291 = vmatpush.bf16.msrb.mxu3 %v1278_v9 }
   0xf   :  { %575 = vmatpush.bf16.msra.mxu1 %v1277_v10 }
  0x12   :  { %1292 = vmatpush.bf16.msrb.mxu3 %v1277_v10 }
  0x13   :  { %576 = vmatpush.bf16.msra.mxu1 %v1276_v11 }
  0x16   :  { %1293 = vmatpush.bf16.msrb.mxu3 %v1276_v11 }
  0x17   :  { %577 = vmatpush.bf16.msra.mxu1 %v1275_v12 }
  0x19   :  { %1157 = vmatmul.msk.bf16.gmra.mxu0 %vm220_vm0, %v1246_v3 }
  0x1a   :  { %1294 = vmatpush.bf16.msrb.mxu3 %v1275_v12  ;;  %v1505_v12 = vld [vmem:[%s1671_s5 + $0x18] sm:$0xff] }
  0x1b   :  { %578 = vmatpush.bf16.msra.mxu1 %v1274_v14 }
  0x1e   :  { %1295 = vmatpush.bf16.msrb.mxu3 %v1274_v14 }
  0x1f   :  { %579 = vmatpush.bf16.msra.mxu1 %v1273_v15 }
  0x22   :  { %1296 = vmatpush.bf16.msrb.mxu3 %v1273_v15 }
  0x23   :  { %580 = vmatpush.bf16.msra.mxu1 %v1272_v16 }
  0x26   :  { %1297 = vmatpush.bf16.msrb.mxu3 %v1272_v16  ;;  %v1511_v16 = vld [vmem:[%s1671_s5 + $0x10] sm:$0xff] }
  0x29   :  { %1158 = vmatmul.msk.bf16.gmra.mxu0 %vm220_vm0, %v1247_v4  ;;  %v1286_v4 = vld [vmem:[%s1671_s5 + $0x30] sm:$0xff] }
  0x2a   :  { %847 = vmatpush.bf16.msra.mxu2 %v1286_v4 }
  0x2e   :  { %848 = vmatpush.bf16.msra.mxu2 %v1490_v7 }
  0x39   :  { %1159 = vmatmul.msk.bf16.gmra.mxu0 %vm220_vm0, %v1248_v5  ;;  %v1259_v5 = vld [vmem:[%s1666_s0 + $0x70] sm:$0xff] }
  0x49   :  { %1160 = vmatmul.msk.bf16.gmra.mxu0 %vm220_vm0, %v1249_v6 }
  0x59   :  { %1161 = vmatmul.msk.bf16.gmra.mxu0 %vm220_vm0, %v1250_v8  ;;  %v1497_v8 = vld [vmem:[%s1671_s5 + $0x20] sm:$0xff] }
  0x5a   :  { %849 = vmatpush.bf16.msra.mxu2 %v1497_v8 }
  0x5e   :  { %850 = vmatpush.bf16.msra.mxu2 %v1505_v12 }
  0x62   :  { %851 = vmatpush.bf16.msra.mxu2 %v1511_v16 }
  0x69   :  { %1162 = vmatmul.msk.bf16.gmra.mxu0 %vm220_vm0, %v1251_v13 }
  0x79   :  { %1163 = vmatmul.msk.bf16.gmra.mxu0 %vm220_vm0, %v1252_v17  ;;  %v1260_v17 = vld [vmem:[%s1666_s0 + $0x78] sm:$0xff] }
  0x86   :  { %v305_v19 = vpop.f32.mrf.mxu0 }
  0x87   :  { %v306_v21 = vadd.f32 %v1443_v20, %v305_v19  ;;  %v1520_v19 = vld [vmem:[%s1671_s5 + $0x8] sm:$0xff] }
  0x88   :  { %852 = vmatpush.bf16.msra.mxu2 %v1520_v19 }
  0x89   :  { %1164 = vmatmul.msk.bf16.gmra.mxu0 %vm220_vm0, %v1253_v18  ;;  %v430_v24 = vmax.f32 %v306_v21, 0.0  ;;  %v1527_v21 = vld [vmem:[%s1671_s5] sm:$0xff] }
  0x8c   :  { %853 = vmatpush.bf16.msra.mxu2 %v1527_v21 }
  0x8e   :  { %v307_v22 = vpop.f32.mrf.mxu0 }
  0x8f   :  { %v308_v23 = vadd.f32 %v1443_v20, %v307_v22 }
  0x91   :  { %v431_v25 = vmax.f32 %v308_v23, 0.0 }
  0x93   :  { %v480_v26 = vpack.c.bf16 %v431_v25, %v430_v24 }
  0x95   :  { %581 = vmatmul.bf16.vlgmr.msra.gmra.mxu1 %v480_v26 }
  0x96   :  { %v310_v28 = vpop.f32.mrf.mxu0 }
  0x97   :  { %v311_v29 = vadd.f32 %v1443_v20, %v310_v28  ;;  %v1261_v28 = vld [vmem:[%s1666_s0 + $0x80] sm:$0xff] }
  0x99   :  { %1165 = vmatmul.msk.bf16.gmra.mxu0 %vm220_vm0, %v1254_v27  ;;  %v432_v32 = vmax.f32 %v311_v29, 0.0 }
  0x9e   :  { %v312_v30 = vpop.f32.mrf.mxu0 }
  0x9f   :  { %v313_v31 = vadd.f32 %v1443_v20, %v312_v30 }
  0xa1   :  { %v433_v33 = vmax.f32 %v313_v31, 0.0 }
  0xa3   :  { %v481_v34 = vpack.c.bf16 %v433_v33, %v432_v32 }
  0xa5   :  { %586 = vmatmul.bf16.gmra.mxu1 %v481_v34 }
  0xa6   :  { %v315_v36 = vpop.f32.mrf.mxu0 }
  0xa7   :  { %v316_v37 = vadd.f32 %v1443_v20, %v315_v36 }
  0xa9   :  { %1166 = vmatmul.msk.bf16.gmra.mxu0 %vm220_vm0, %v1255_v35  ;;  %v434_v40 = vmax.f32 %v316_v37, 0.0  ;;  %v1541_v37 = vld [vmem:[%s1670_s4] ss:$0 sm:$0xff] }
  0xae   :  { %v317_v38 = vpop.f32.mrf.mxu0 }
  0xaf   :  { %v318_v39 = vadd.f32 %v1443_v20, %v317_v38  ;;  %v1262_v38 = vld [vmem:[%s1666_s0 + $0x88] sm:$0xff] }
  0xb1   :  { %v435_v41 = vmax.f32 %v318_v39, 0.0 }
  0xb3   :  { %v482_v42 = vpack.c.bf16 %v435_v41, %v434_v40  ;;  %v1265_v41 = vld [vmem:[%s1666_s0 + $0xa0] sm:$0xff] }
  0xb4   :  { %1176 = vmatmul.msk.bf16.vlgmr.msra.gmra.mxu3 %vm220_vm0, %v1265_v41  ;;  %v1269_v41 = vld [vmem:[%s1666_s0 + $0xc0] sm:$0xff] }
  0xb5   :  { %591 = vmatmul.bf16.gmra.mxu1 %v482_v42  ;;  %1298 = vmatpush.bf16.msra.mxu3 %v1287_v0 }
  0xb6   :  { %v320_v44 = vpop.f32.mrf.mxu0 }
  0xb7   :  { %v321_v45 = vadd.f32 %v1443_v20, %v320_v44 }
  0xb9   :  { %1167 = vmatmul.msk.bf16.gmra.mxu0 %vm220_vm0, %v1256_v43  ;;  %v436_v48 = vmax.f32 %v321_v45, 0.0  ;;  %1299 = vmatpush.bf16.msra.mxu3 %v1286_v4 }
  0xbd   :  { %1300 = vmatpush.bf16.msra.mxu3 %v1490_v7 }
  0xbe   :  { %v322_v46 = vpop.f32.mrf.mxu0 }
  0xbf   :  { %v323_v47 = vadd.f32 %v1443_v20, %v322_v46 }
  0xc1   :  { %v437_v49 = vmax.f32 %v323_v47, 0.0  ;;  %1301 = vmatpush.bf16.msra.mxu3 %v1497_v8 }
  0xc3   :  { %v483_v50 = vpack.c.bf16 %v437_v49, %v436_v48 }
  0xc5   :  { %596 = vmatmul.bf16.gmra.mxu1 %v483_v50  ;;  %1302 = vmatpush.bf16.msra.mxu3 %v1505_v12 }
  0xc6   :  { %v325_v52 = vpop.f32.mrf.mxu0 }
  0xc7   :  { %v326_v53 = vadd.f32 %v1443_v20, %v325_v52 }
  0xc9   :  { %1168 = vmatmul.msk.bf16.gmra.mxu0 %vm220_vm0, %v1257_v51  ;;  %v438_v56 = vmax.f32 %v326_v53, 0.0  ;;  %1303 = vmatpush.bf16.msra.mxu3 %v1511_v16 }
  0xcd   :  { %1304 = vmatpush.bf16.msra.mxu3 %v1520_v19 }
  0xce   :  { %v327_v54 = vpop.f32.mrf.mxu0 }
  0xcf   :  { %v328_v55 = vadd.f32 %v1443_v20, %v327_v54  ;;  %v1263_v54 = vld [vmem:[%s1666_s0 + $0x90] sm:$0xff] }
  0xd1   :  { %v439_v57 = vmax.f32 %v328_v55, 0.0  ;;  %1305 = vmatpush.bf16.msra.mxu3 %v1527_v21 }
  0xd3   :  { %v484_v58 = vpack.c.bf16 %v439_v57, %v438_v56  ;;  %v1266_v57 = vld [vmem:[%s1666_s0 + $0xa8] sm:$0xff] }
  0xd4   :  { %1177 = vmatmul.msk.bf16.gmra.mxu3 %vm220_vm0, %v1266_v57 }
  0xd5   :  { %601 = vmatmul.bf16.gmra.mxu1 %v484_v58 }
  0xd6   :  { %v330_v60 = vpop.f32.mrf.mxu0 }
  0xd7   :  { %v331_v61 = vadd.f32 %v1443_v20, %v330_v60 }
  0xd9   :  { %1169 = vmatmul.msk.bf16.gmra.mxu0 %vm220_vm0, %v1258_v59  ;;  %v440_v1 = vmax.f32 %v331_v61, 0.0 }
  0xde   :  { %v332_v62 = vpop.f32.mrf.mxu0 }
  0xdf   :  { %v333_v63 = vadd.f32 %v1443_v20, %v332_v62 }
  0xe1   :  { %v441_v2 = vmax.f32 %v333_v63, 0.0 }
  0xe3   :  { %v485_v3 = vpack.c.bf16 %v441_v2, %v440_v1 }
  0xe5   :  { %606 = vmatmul.bf16.gmra.mxu1 %v485_v3 }
  0xe6   :  { %v335_v6 = vpop.f32.mrf.mxu0 }
  0xe7   :  { %v336_v9 = vadd.f32 %v1443_v20, %v335_v6  ;;  %v1264_v6 = vld [vmem:[%s1666_s0 + $0x98] sm:$0xff] }
  0xe9   :  { %1170 = vmatmul.msk.bf16.gmra.mxu0 %vm220_vm0, %v1259_v5  ;;  %v442_v13 = vmax.f32 %v336_v9, 0.0  ;;  %v1267_v9 = vld [vmem:[%s1666_s0 + $0xb0] sm:$0xff] }
  0xea   :  { %1178 = vmatmul.msk.bf16.gmra.mxu3 %vm220_vm0, %v1267_v9 }
  0xee   :  { %v337_v10 = vpop.f32.mrf.mxu0 }
  0xef   :  { %v338_v11 = vadd.f32 %v1443_v20, %v337_v10 }
  0xf1   :  { %v443_v14 = vmax.f32 %v338_v11, 0.0 }
  0xf3   :  { %v486_v15 = vpack.c.bf16 %v443_v14, %v442_v13 }
  0xf5   :  { %611 = vmatmul.bf16.gmra.mxu1 %v486_v15 }
  0xf6   :  { %v340_v18 = vpop.f32.mrf.mxu0 }
  0xf7   :  { %v341_v22 = vadd.f32 %v1443_v20, %v340_v18 }
  0xf9   :  { %1171 = vmatmul.msk.bf16.gmra.mxu0 %vm220_vm0, %v1260_v17  ;;  %v444_v25 = vmax.f32 %v341_v22, 0.0 }
  0xfe   :  { %v342_v23 = vpop.f32.mrf.mxu0 }
  0xff   :  { %v343_v24 = vadd.f32 %v1443_v20, %v342_v23 }
 0x101   :  { %v445_v26 = vmax.f32 %v343_v24, 0.0 }
 0x103   :  { %v487_v27 = vpack.c.bf16 %v445_v26, %v444_v25  ;;  %v1268_v25 = vld [vmem:[%s1666_s0 + $0xb8] sm:$0xff]  ;;  %s1337_s0 = smov [#allocation2]  }
 0x104   :  { %1179 = vmatmul.msk.bf16.gmra.mxu3 %vm220_vm0, %v1268_v25  ;;  %s1034_s30 = sshll.u32 %s1337_s0, 4  ;;  %s1035_s30 = int_to_ptr.vmem [resolvable:$true] %s1034_s30 }
 0x105   :  { %616 = vmatmul.bf16.gmra.mxu1 %v487_v27 }
 0x106   :  { %v345_v29 = vpop.f32.mrf.mxu0 }
 0x107   :  { %v346_v30 = vadd.f32 %v1443_v20, %v345_v29 }
 0x109   :  { %1172 = vmatmul.msk.bf16.gmra.mxu0 %vm220_vm0, %v1261_v28  ;;  %v446_v33 = vmax.f32 %v346_v30, 0.0 }
 0x10e   :  { %v347_v31 = vpop.f32.mrf.mxu0 }
 0x10f   :  { %v348_v32 = vadd.f32 %v1443_v20, %v347_v31 }
 0x111   :  { %v447_v34 = vmax.f32 %v348_v32, 0.0 }
 0x112   :  { %v582_v35 = vpop.f32.mrf.mxu1 }
 0x113   :  { %v488_v36 = vpack.c.bf16 %v447_v34, %v446_v33  ;;  %v583_v40 = vadd.f32 %v1541_v37, %v582_v35 }
 0x114   :  { %1180 = vmatmul.msk.bf16.gmra.mxu3 %vm220_vm0, %v1269_v41 }
 0x115   :  { %621 = vmatmul.bf16.gmra.mxu1 %v488_v36  ;;  %v707_v44 = vmax.f32 %v583_v40, 0.0 }
 0x116   :  { %v350_v39 = vpop.f32.mrf.mxu0 }
 0x117   :  { %v351_v45 = vadd.f32 %v1443_v20, %v350_v39 }
 0x119   :  { %1173 = vmatmul.msk.bf16.gmra.mxu0 %vm220_vm0, %v1262_v38  ;;  %v448_v50 = vmax.f32 %v351_v45, 0.0 }
 0x11a   :  { %v584_v42 = vpop.f32.mrf.mxu1 }
 0x11b   :  { %v585_v43 = vadd.f32 %v1541_v37, %v584_v42 }
 0x11d   :  { %v708_v46 = vmax.f32 %v585_v43, 0.0 }
 0x11e   :  { %v352_v47 = vpop.f32.mrf.mxu0 }
 0x11f   :  { %v353_v48 = vadd.f32 %v1443_v20, %v352_v47  ;;  %v757_v49 = vpack.c.bf16 %v708_v46, %v707_v44 }
 0x121   :  { %v449_v51 = vmax.f32 %v353_v48, 0.0  ;;  %854 = vmatmul.bf16.vlgmr.msra.gmra.mxu2 %v757_v49 }
 0x122   :  { %v587_v52 = vpop.f32.mrf.mxu1 }
 0x123   :  { %v489_v53 = vpack.c.bf16 %v449_v51, %v448_v50  ;;  %v588_v56 = vadd.f32 %v1541_v37, %v587_v52 }
 0x125   :  { %626 = vmatmul.bf16.gmra.mxu1 %v489_v53  ;;  %v709_v60 = vmax.f32 %v588_v56, 0.0 }
 0x126   :  { %v355_v55 = vpop.f32.mrf.mxu0 }
 0x127   :  { %v356_v61 = vadd.f32 %v1443_v20, %v355_v55 }
 0x129   :  { %1174 = vmatmul.msk.bf16.gmra.mxu0 %vm220_vm0, %v1263_v54  ;;  %v450_v2 = vmax.f32 %v356_v61, 0.0 }
 0x12a   :  { %v589_v58 = vpop.f32.mrf.mxu1 }
 0x12b   :  { %v590_v59 = vadd.f32 %v1541_v37, %v589_v58 }
 0x12d   :  { %v710_v62 = vmax.f32 %v590_v59, 0.0 }
 0x12e   :  { %v357_v63 = vpop.f32.mrf.mxu0 }
 0x12f   :  { %v358_v0 = vadd.f32 %v1443_v20, %v357_v63  ;;  %v758_v1 = vpack.c.bf16 %v710_v62, %v709_v60 }
 0x131   :  { %v451_v3 = vmax.f32 %v358_v0, 0.0  ;;  %859 = vmatmul.bf16.gmra.mxu2 %v758_v1 }
 0x132   :  { %v592_v4 = vpop.f32.mrf.mxu1 }
 0x133   :  { %v490_v5 = vpack.c.bf16 %v451_v3, %v450_v2  ;;  %v593_v8 = vadd.f32 %v1541_v37, %v592_v4 }
 0x135   :  { %631 = vmatmul.bf16.gmra.mxu1 %v490_v5  ;;  %v711_v12 = vmax.f32 %v593_v8, 0.0 }
 0x136   :  { %v360_v7 = vpop.f32.mrf.mxu0 }
 0x137   :  { %v361_v13 = vadd.f32 %v1443_v20, %v360_v7 }
 0x139   :  { %1175 = vmatmul.msk.bf16.gmra.mxu0 %vm220_vm0, %v1264_v6  ;;  %v452_v18 = vmax.f32 %v361_v13, 0.0 }
 0x13a   :  { %v594_v10 = vpop.f32.mrf.mxu1 }
 0x13b   :  { %v595_v11 = vadd.f32 %v1541_v37, %v594_v10 }
 0x13d   :  { %v712_v14 = vmax.f32 %v595_v11, 0.0 }
 0x13e   :  { %v362_v15 = vpop.f32.mrf.mxu0 }
 0x13f   :  { %v363_v16 = vadd.f32 %v1443_v20, %v362_v15  ;;  %v759_v17 = vpack.c.bf16 %v712_v14, %v711_v12 }
 0x141   :  { %v453_v19 = vmax.f32 %v363_v16, 0.0  ;;  %864 = vmatmul.bf16.gmra.mxu2 %v759_v17 }
 0x142   :  { %v597_v21 = vpop.f32.mrf.mxu1 }
 0x143   :  { %v491_v22 = vpack.c.bf16 %v453_v19, %v452_v18  ;;  %v598_v24 = vadd.f32 %v1541_v37, %v597_v21 }
 0x145   :  { %636 = vmatmul.bf16.gmra.mxu1 %v491_v22  ;;  %v713_v28 = vmax.f32 %v598_v24, 0.0 }
 0x146   :  { %v365_v23 = vpop.f32.mrf.mxu0 }
 0x147   :  { %v366_v29 = vadd.f32 %v1443_v20, %v365_v23 }
 0x149   :  { %v454_v34 = vmax.f32 %v366_v29, 0.0 }
 0x14a   :  { %v599_v26 = vpop.f32.mrf.mxu1 }
 0x14b   :  { %v600_v27 = vadd.f32 %v1541_v37, %v599_v26 }
 0x14d   :  { %v714_v30 = vmax.f32 %v600_v27, 0.0 }
 0x14e   :  { %v367_v31 = vpop.f32.mrf.mxu0 }
 0x14f   :  { %v368_v32 = vadd.f32 %v1443_v20, %v367_v31  ;;  %v760_v33 = vpack.c.bf16 %v714_v30, %v713_v28 }
 0x151   :  { %v455_v35 = vmax.f32 %v368_v32, 0.0  ;;  %869 = vmatmul.bf16.gmra.mxu2 %v760_v33 }
 0x152   :  { %v602_v36 = vpop.f32.mrf.mxu1 }
 0x153   :  { %v492_v38 = vpack.c.bf16 %v455_v35, %v454_v34  ;;  %v603_v40 = vadd.f32 %v1541_v37, %v602_v36 }
 0x155   :  { %641 = vmatmul.bf16.gmra.mxu1 %v492_v38  ;;  %v715_v44 = vmax.f32 %v603_v40, 0.0 }
 0x156   :  { %v370_v39 = vpop.f32.mrf.mxu0 }
 0x157   :  { %v371_v45 = vadd.f32 %v1443_v20, %v370_v39 }
 0x159   :  { %v456_v50 = vmax.f32 %v371_v45, 0.0 }
 0x15a   :  { %v604_v42 = vpop.f32.mrf.mxu1 }
 0x15b   :  { %v605_v43 = vadd.f32 %v1541_v37, %v604_v42 }
 0x15d   :  { %v716_v46 = vmax.f32 %v605_v43, 0.0 }
 0x15e   :  { %v372_v47 = vpop.f32.mrf.mxu0 }
 0x15f   :  { %v373_v48 = vadd.f32 %v1443_v20, %v372_v47  ;;  %v761_v49 = vpack.c.bf16 %v716_v46, %v715_v44 }
 0x161   :  { %v457_v51 = vmax.f32 %v373_v48, 0.0  ;;  %874 = vmatmul.bf16.gmra.mxu2 %v761_v49 }
 0x162   :  { %v607_v52 = vpop.f32.mrf.mxu1 }
 0x163   :  { %v493_v53 = vpack.c.bf16 %v457_v51, %v456_v50  ;;  %v608_v55 = vadd.f32 %v1541_v37, %v607_v52 }
 0x165   :  { %646 = vmatmul.bf16.gmra.mxu1 %v493_v53  ;;  %v717_v58 = vmax.f32 %v608_v55, 0.0 }
 0x166   :  { %v375_v54 = vpop.f32.mrf.mxu0 }
 0x167   :  { %v376_v59 = vadd.f32 %v1443_v20, %v375_v54 }
 0x169   :  { %v458_v0 = vmax.f32 %v376_v59, 0.0 }
 0x16a   :  { %v609_v56 = vpop.f32.mrf.mxu1 }
 0x16b   :  { %v610_v57 = vadd.f32 %v1541_v37, %v609_v56 }
 0x16d   :  { %v718_v60 = vmax.f32 %v610_v57, 0.0 }
 0x16e   :  { %v377_v61 = vpop.f32.mrf.mxu0 }
 0x16f   :  { %v378_v62 = vadd.f32 %v1443_v20, %v377_v61  ;;  %v762_v63 = vpack.c.bf16 %v718_v60, %v717_v58  ;;  %v405_v58 = vpop.f32.mrf.mxu3 }
 0x171   :  { %v459_v1 = vmax.f32 %v378_v62, 0.0  ;;  %879 = vmatmul.bf16.gmra.mxu2 %v762_v63 }
 0x172   :  { %v612_v2 = vpop.f32.mrf.mxu1 }
 0x173   :  { %v494_v3 = vpack.c.bf16 %v459_v1, %v458_v0  ;;  %v613_v5 = vadd.f32 %v1541_v37, %v612_v2 }
 0x175   :  { %651 = vmatmul.bf16.gmra.mxu1 %v494_v3  ;;  %v719_v8 = vmax.f32 %v613_v5, 0.0 }
 0x176   :  { %v380_v4 = vpop.f32.mrf.mxu0 }
 0x177   :  { %v381_v9 = vadd.f32 %v1443_v20, %v380_v4  ;;  %v407_v3 = vpop.f32.mrf.mxu3 }
 0x179   :  { %v460_v14 = vmax.f32 %v381_v9, 0.0 }
 0x17a   :  { %v614_v6 = vpop.f32.mrf.mxu1 }
 0x17b   :  { %v615_v7 = vadd.f32 %v1541_v37, %v614_v6 }
 0x17d   :  { %v720_v10 = vmax.f32 %v615_v7, 0.0 }
 0x17e   :  { %v382_v11 = vpop.f32.mrf.mxu0 }
 0x17f   :  { %v383_v12 = vadd.f32 %v1443_v20, %v382_v11  ;;  %v763_v13 = vpack.c.bf16 %v720_v10, %v719_v8 }
 0x181   :  { %v461_v15 = vmax.f32 %v383_v12, 0.0  ;;  %884 = vmatmul.bf16.gmra.mxu2 %v763_v13 }
 0x182   :  { %v617_v16 = vpop.f32.mrf.mxu1 }
 0x183   :  { %v495_v17 = vpack.c.bf16 %v461_v15, %v460_v14  ;;  %v618_v19 = vadd.f32 %v1541_v37, %v617_v16 }
 0x185   :  { %656 = vmatmul.bf16.gmra.mxu1 %v495_v17  ;;  %v721_v23 = vmax.f32 %v618_v19, 0.0  ;;  %v410_v17 = vpop.f32.mrf.mxu3 }
 0x186   :  { %v385_v18 = vpop.f32.mrf.mxu0 }
 0x187   :  { %v386_v24 = vadd.f32 %v1443_v20, %v385_v18 }
 0x189   :  { %v462_v29 = vmax.f32 %v386_v24, 0.0  ;;  %v408_v24 = vadd.f32 %v1443_v20, %v407_v3 }
 0x18a   :  { %v619_v21 = vpop.f32.mrf.mxu1 }
 0x18b   :  { %v620_v22 = vadd.f32 %v1541_v37, %v619_v21 }
 0x18d   :  { %v722_v25 = vmax.f32 %v620_v22, 0.0 }
 0x18e   :  { %v387_v26 = vpop.f32.mrf.mxu0 }
 0x18f   :  { %v388_v27 = vadd.f32 %v1443_v20, %v387_v26  ;;  %v764_v28 = vpack.c.bf16 %v722_v25, %v721_v23  ;;  %v406_v23 = vadd.f32 %v1443_v20, %v405_v58 }
 0x191   :  { %v463_v30 = vmax.f32 %v388_v27, 0.0  ;;  %889 = vmatmul.bf16.gmra.mxu2 %v764_v28  ;;  %v412_v27 = vpop.f32.mrf.mxu3 }
 0x192   :  { %v622_v31 = vpop.f32.mrf.mxu1 }
 0x193   :  { %v496_v32 = vpack.c.bf16 %v463_v30, %v462_v29  ;;  %v623_v34 = vadd.f32 %v1541_v37, %v622_v31  ;;  %v470_v30 = vmax.f32 %v406_v23, 0.0  ;;  %v471_v31 = vmax.f32 %v408_v24, 0.0 }
 0x195   :  { %661 = vmatmul.bf16.gmra.mxu1 %v496_v32  ;;  %v723_v38 = vmax.f32 %v623_v34, 0.0  ;;  %v500_v34 = vpack.c.bf16 %v471_v31, %v470_v30 }
 0x196   :  { %v390_v33 = vpop.f32.mrf.mxu0 }
 0x197   :  { %v391_v39 = vadd.f32 %v1443_v20, %v390_v33 }
 0x199   :  { %v464_v44 = vmax.f32 %v391_v39, 0.0 }
 0x19a   :  { %v624_v35 = vpop.f32.mrf.mxu1 }
 0x19b   :  { %v625_v36 = vadd.f32 %v1541_v37, %v624_v35 }
 0x19d   :  { %v724_v40 = vmax.f32 %v625_v36, 0.0  ;;  %v415_v36 = vpop.f32.mrf.mxu3 }
 0x19e   :  { %v392_v41 = vpop.f32.mrf.mxu0 }
 0x19f   :  { %v393_v42 = vadd.f32 %v1443_v20, %v392_v41  ;;  %v765_v43 = vpack.c.bf16 %v724_v40, %v723_v38  ;;  %v411_v40 = vadd.f32 %v1443_v20, %v410_v17  ;;  %v413_v41 = vadd.f32 %v1443_v20, %v412_v27 }
 0x1a1   :  { %v465_v45 = vmax.f32 %v393_v42, 0.0  ;;  %894 = vmatmul.bf16.gmra.mxu2 %v765_v43 }
 0x1a2   :  { %v627_v46 = vpop.f32.mrf.mxu1 }
 0x1a3   :  { %v497_v47 = vpack.c.bf16 %v465_v45, %v464_v44  ;;  %v628_v50 = vadd.f32 %v1541_v37, %v627_v46  ;;  %v472_v46 = vmax.f32 %v411_v40, 0.0 }
 0x1a4   :  { %v855_v48 = vpop.f32.mrf.mxu2 }
 0x1a5   :  { %980 = vst [vmem:[#allocation2] sm:$0xff] %v855_v48  ;;  %666 = vmatmul.bf16.gmra.mxu1 %v497_v47  ;;  %v725_v54 = vmax.f32 %v628_v50, 0.0  ;;  %v473_v47 = vmax.f32 %v413_v41, 0.0 }
 0x1a6   :  { %v395_v49 = vpop.f32.mrf.mxu0 }
 0x1a7   :  { %v396_v55 = vadd.f32 %v1443_v20, %v395_v49  ;;  %v417_v49 = vpop.f32.mrf.mxu3 }
 0x1a9   :  { %v466_v61 = vmax.f32 %v396_v55, 0.0 }
 0x1aa   :  { %v629_v51 = vpop.f32.mrf.mxu1 }
 0x1ab   :  { %v630_v52 = vadd.f32 %v1541_v37, %v629_v51  ;;  %v501_v51 = vpack.c.bf16 %v473_v47, %v472_v46 }
 0x1ac   :  { %v857_v53 = vpop.f32.mrf.mxu2 }
 0x1ad   :  { %v726_v56 = vmax.f32 %v630_v52, 0.0  ;;  %981 = vst [vmem:[#allocation2 + $0x8] sm:$0xff] %v857_v53 }
 0x1ae   :  { %v397_v57 = vpop.f32.mrf.mxu0 }
 0x1af   :  { %v398_v59 = vadd.f32 %v1443_v20, %v397_v57  ;;  %v766_v60 = vpack.c.bf16 %v726_v56, %v725_v54  ;;  %v420_v55 = vpop.f32.mrf.mxu3  ;;  %v416_v56 = vadd.f32 %v1443_v20, %v415_v36  ;;  %v418_v57 = vadd.f32 %v1443_v20, %v417_v49 }
 0x1b1   :  { %v467_v62 = vmax.f32 %v398_v59, 0.0  ;;  %899 = vmatmul.bf16.gmra.mxu2 %v766_v60 }
 0x1b2   :  { %v632_v63 = vpop.f32.mrf.mxu1 }
 0x1b3   :  { %v498_v0 = vpack.c.bf16 %v467_v62, %v466_v61  ;;  %v633_v4 = vadd.f32 %v1541_v37, %v632_v63  ;;  %v474_v62 = vmax.f32 %v416_v56, 0.0  ;;  %v475_v63 = vmax.f32 %v418_v57, 0.0 }
 0x1b4   :  { %v860_v1 = vpop.f32.mrf.mxu2 }
 0x1b5   :  { %982 = vst [vmem:[#allocation2 + $0x10] sm:$0xff] %v860_v1  ;;  %671 = vmatmul.bf16.gmra.mxu1 %v498_v0  ;;  %v727_v8 = vmax.f32 %v633_v4, 0.0 }
 0x1b6   :  { %v400_v2 = vpop.f32.mrf.mxu0 }
 0x1b7   :  { %v401_v9 = vadd.f32 %v1443_v20, %v400_v2  ;;  %v502_v2 = vpack.c.bf16 %v475_v63, %v474_v62  ;;  %v422_v4 = vpop.f32.mrf.mxu3 }
 0x1b9   :  { %v468_v14 = vmax.f32 %v401_v9, 0.0 }
 0x1ba   :  { %v634_v5 = vpop.f32.mrf.mxu1 }
 0x1bb   :  { %v635_v6 = vadd.f32 %v1541_v37, %v634_v5 }
 0x1bc   :  { %v862_v7 = vpop.f32.mrf.mxu2 }
 0x1bd   :  { %v728_v10 = vmax.f32 %v635_v6, 0.0  ;;  %983 = vst [vmem:[#allocation2 + $0x18] sm:$0xff] %v862_v7  ;;  %v421_v7 = vadd.f32 %v1443_v20, %v420_v55 }
 0x1be   :  { %v402_v11 = vpop.f32.mrf.mxu0 }
 0x1bf   :  { %v403_v12 = vadd.f32 %v1443_v20, %v402_v11  ;;  %v767_v13 = vpack.c.bf16 %v728_v10, %v727_v8  ;;  %v423_v8 = vadd.f32 %v1443_v20, %v422_v4 }
 0x1c1   :  { %v469_v15 = vmax.f32 %v403_v12, 0.0  ;;  %904 = vmatmul.bf16.gmra.mxu2 %v767_v13  ;;  %v425_v13 = vpop.f32.mrf.mxu3 }
 0x1c2   :  { %v637_v16 = vpop.f32.mrf.mxu1  ;;  %v426_v24 = vadd.f32 %v1443_v20, %v425_v13 }
 0x1c3   :  { %v499_v18 = vpack.c.bf16 %v469_v15, %v468_v14  ;;  %v638_v21 = vadd.f32 %v1541_v37, %v637_v16  ;;  %v476_v14 = vmax.f32 %v421_v7, 0.0  ;;  %v477_v15 = vmax.f32 %v423_v8, 0.0 }
 0x1c4   :  { %v865_v19 = vpop.f32.mrf.mxu2  ;;  %v478_v30 = vmax.f32 %v426_v24, 0.0 }
 0x1c5   :  { %984 = vst [vmem:[#allocation2 + $0x20] sm:$0xff] %v865_v19  ;;  %676 = vmatmul.bf16.vlgmr.msrb.gmra.mxu3 %v499_v18  ;;  %v729_v28 = vmax.f32 %v638_v21, 0.0  ;;  %v503_v18 = vpack.c.bf16 %v477_v15, %v476_v14 }
 0x1c9   :  { %v427_v21 = vpop.f32.mrf.mxu3 }
 0x1ca   :  { %v639_v22 = vpop.f32.mrf.mxu1 }
 0x1cb   :  { %v640_v25 = vadd.f32 %v1541_v37, %v639_v22 }
 0x1cc   :  { %v867_v26 = vpop.f32.mrf.mxu2 }
 0x1cd   :  { %v730_v29 = vmax.f32 %v640_v25, 0.0  ;;  %985 = vst [vmem:[#allocation2 + $0x28] sm:$0xff] %v867_v26  ;;  %v428_v25 = vadd.f32 %v1443_v20, %v427_v21 }
 0x1cf   :  { %v768_v32 = vpack.c.bf16 %v730_v29, %v729_v28  ;;  %v479_v31 = vmax.f32 %v428_v25, 0.0 }
 0x1d1   :  { %909 = vmatmul.bf16.gmra.mxu2 %v768_v32 }
 0x1d2   :  { %v642_v33 = vpop.f32.mrf.mxu1 }
 0x1d3   :  { %v643_v38 = vadd.f32 %v1541_v37, %v642_v33 }
 0x1d4   :  { %v870_v35 = vpop.f32.mrf.mxu2 }
 0x1d5   :  { %986 = vst [vmem:[#allocation2 + $0x30] sm:$0xff] %v870_v35  ;;  %681 = vmatmul.bf16.gmra.mxu3 %v500_v34  ;;  %v731_v44 = vmax.f32 %v643_v38, 0.0  ;;  %v504_v34 = vpack.c.bf16 %v479_v31, %v478_v30 }
 0x1da   :  { %v644_v39 = vpop.f32.mrf.mxu1 }
 0x1db   :  { %v645_v42 = vadd.f32 %v1541_v37, %v644_v39 }
 0x1dc   :  { %v872_v43 = vpop.f32.mrf.mxu2 }
 0x1dd   :  { %v732_v45 = vmax.f32 %v645_v42, 0.0  ;;  %987 = vst [vmem:[#allocation2 + $0x38] sm:$0xff] %v872_v43 }
 0x1df   :  { %v769_v48 = vpack.c.bf16 %v732_v45, %v731_v44 }
 0x1e1   :  { %914 = vmatmul.bf16.gmra.mxu2 %v769_v48 }
 0x1e2   :  { %v647_v50 = vpop.f32.mrf.mxu1 }
 0x1e3   :  { %v648_v53 = vadd.f32 %v1541_v37, %v647_v50 }
 0x1e4   :  { %v875_v52 = vpop.f32.mrf.mxu2 }
 0x1e5   :  { %988 = vst [vmem:[#allocation2 + $0x40] sm:$0xff] %v875_v52  ;;  %686 = vmatmul.bf16.gmra.mxu3 %v501_v51  ;;  %v733_v60 = vmax.f32 %v648_v53, 0.0 }
 0x1ea   :  { %v649_v54 = vpop.f32.mrf.mxu1 }
 0x1eb   :  { %v650_v58 = vadd.f32 %v1541_v37, %v649_v54 }
 0x1ec   :  { %v877_v59 = vpop.f32.mrf.mxu2 }
 0x1ed   :  { %v734_v61 = vmax.f32 %v650_v58, 0.0  ;;  %989 = vst [vmem:[#allocation2 + $0x48] sm:$0xff] %v877_v59 }
 0x1ef   :  { %v770_v0 = vpack.c.bf16 %v734_v61, %v733_v60 }
 0x1f1   :  { %919 = vmatmul.bf16.gmra.mxu2 %v770_v0 }
 0x1f2   :  { %v652_v1 = vpop.f32.mrf.mxu1 }
 0x1f3   :  { %v653_v5 = vadd.f32 %v1541_v37, %v652_v1 }
 0x1f4   :  { %v880_v3 = vpop.f32.mrf.mxu2 }
 0x1f5   :  { %990 = vst [vmem:[#allocation2 + $0x50] sm:$0xff] %v880_v3  ;;  %691 = vmatmul.bf16.gmra.mxu3 %v502_v2  ;;  %v735_v11 = vmax.f32 %v653_v5, 0.0 }
 0x1fa   :  { %v654_v6 = vpop.f32.mrf.mxu1 }
 0x1fb   :  { %v655_v9 = vadd.f32 %v1541_v37, %v654_v6 }
 0x1fc   :  { %v882_v10 = vpop.f32.mrf.mxu2 }
 0x1fd   :  { %v736_v12 = vmax.f32 %v655_v9, 0.0  ;;  %991 = vst [vmem:[#allocation2 + $0x58] sm:$0xff] %v882_v10 }
 0x1ff   :  { %v771_v16 = vpack.c.bf16 %v736_v12, %v735_v11 }
 0x201   :  { %924 = vmatmul.bf16.gmra.mxu2 %v771_v16 }
 0x202   :  { %v657_v17 = vpop.f32.mrf.mxu1 }
 0x203   :  { %v658_v22 = vadd.f32 %v1541_v37, %v657_v17 }
 0x204   :  { %v885_v19 = vpop.f32.mrf.mxu2 }
 0x205   :  { %992 = vst [vmem:[#allocation2 + $0x60] sm:$0xff] %v885_v19  ;;  %696 = vmatmul.bf16.gmra.mxu3 %v503_v18  ;;  %v737_v28 = vmax.f32 %v658_v22, 0.0 }
 0x20a   :  { %v659_v23 = vpop.f32.mrf.mxu1 }
 0x20b   :  { %v660_v26 = vadd.f32 %v1541_v37, %v659_v23 }
 0x20c   :  { %v887_v27 = vpop.f32.mrf.mxu2 }
 0x20d   :  { %v738_v29 = vmax.f32 %v660_v26, 0.0  ;;  %993 = vst [vmem:[#allocation2 + $0x68] sm:$0xff] %v887_v27 }
 0x20f   :  { %v772_v32 = vpack.c.bf16 %v738_v29, %v737_v28 }
 0x211   :  { %929 = vmatmul.bf16.gmra.mxu2 %v772_v32 }
 0x212   :  { %v662_v33 = vpop.f32.mrf.mxu1 }
 0x213   :  { %v663_v36 = vadd.f32 %v1541_v37, %v662_v33 }
 0x214   :  { %v890_v35 = vpop.f32.mrf.mxu2 }
 0x215   :  { %994 = vst [vmem:[#allocation2 + $0x70] sm:$0xff] %v890_v35  ;;  %701 = vmatmul.bf16.gmra.mxu3 %v504_v34  ;;  %v739_v40 = vmax.f32 %v663_v36, 0.0 }
 0x21a   :  { %v664_v38 = vpop.f32.mrf.mxu1 }
 0x21b   :  { %v665_v20 = vadd.f32 %v1541_v37, %v664_v38 }
 0x21c   :  { %v892_v39 = vpop.f32.mrf.mxu2 }
 0x21d   :  { %v740_v41 = vmax.f32 %v665_v20, 0.0  ;;  %995 = vst [vmem:[#allocation2 + $0x78] sm:$0xff] %v892_v39 }
 0x21f   :  { %v773_v42 = vpack.c.bf16 %v740_v41, %v739_v40 }
 0x221   :  { %934 = vmatmul.bf16.gmra.mxu2 %v773_v42 }
 0x222   :  { %v667_v43 = vpop.f32.mrf.mxu1 }
 0x223   :  { %v668_v45 = vadd.f32 %v1541_v37, %v667_v43 }
 0x224   :  { %v895_v44 = vpop.f32.mrf.mxu2 }
 0x225   :  { %996 = vst [vmem:[#allocation2 + $0x80] sm:$0xff] %v895_v44  ;;  %v741_v49 = vmax.f32 %v668_v45, 0.0 }
 0x22a   :  { %v669_v46 = vpop.f32.mrf.mxu1 }
 0x22b   :  { %v670_v47 = vadd.f32 %v1541_v37, %v669_v46 }
 0x22c   :  { %v897_v48 = vpop.f32.mrf.mxu2 }
 0x22d   :  { %v742_v50 = vmax.f32 %v670_v47, 0.0  ;;  %997 = vst [vmem:[#allocation2 + $0x88] sm:$0xff] %v897_v48 }
 0x22f   :  { %v774_v51 = vpack.c.bf16 %v742_v50, %v741_v49 }
 0x231   :  { %939 = vmatmul.bf16.gmra.mxu2 %v774_v51 }
 0x232   :  { %v672_v52 = vpop.f32.mrf.mxu1 }
 0x233   :  { %v673_v54 = vadd.f32 %v1541_v37, %v672_v52 }
 0x234   :  { %v900_v53 = vpop.f32.mrf.mxu2 }
 0x235   :  { %998 = vst [vmem:[#allocation2 + $0x90] sm:$0xff] %v900_v53  ;;  %v743_v58 = vmax.f32 %v673_v54, 0.0 }
 0x23a   :  { %v674_v55 = vpop.f32.mrf.mxu1 }
 0x23b   :  { %v675_v56 = vadd.f32 %v1541_v37, %v674_v55 }
 0x23c   :  { %v902_v57 = vpop.f32.mrf.mxu2 }
 0x23d   :  { %v744_v59 = vmax.f32 %v675_v56, 0.0  ;;  %999 = vst [vmem:[#allocation2 + $0x98] sm:$0xff] %v902_v57 }
 0x23f   :  { %v775_v60 = vpack.c.bf16 %v744_v59, %v743_v58 }
 0x241   :  { %944 = vmatmul.bf16.gmra.mxu2 %v775_v60 }
 0x244   :  { %v905_v61 = vpop.f32.mrf.mxu2 }
 0x245   :  { %1000 = vst [vmem:[#allocation2 + $0xa0] sm:$0xff] %v905_v61 }
 0x248   :  { %v677_v62 = vpop.f32.mrf.mxu3 }
 0x249   :  { %v678_v0 = vadd.f32 %v1541_v37, %v677_v62 }
 0x24b   :  { %v745_v3 = vmax.f32 %v678_v0, 0.0 }
 0x24c   :  { %v907_v63 = vpop.f32.mrf.mxu2 }
 0x24d   :  { %1001 = vst [vmem:[#allocation2 + $0xa8] sm:$0xff] %v907_v63 }
 0x250   :  { %v679_v1 = vpop.f32.mrf.mxu3 }
 0x251   :  { %v680_v2 = vadd.f32 %v1541_v37, %v679_v1 }
 0x253   :  { %v746_v4 = vmax.f32 %v680_v2, 0.0 }
 0x254   :  { %v910_v5 = vpop.f32.mrf.mxu2 }
 0x255   :  { %v776_v6 = vpack.c.bf16 %v746_v4, %v745_v3  ;;  %1002 = vst [vmem:[#allocation2 + $0xb0] sm:$0xff] %v910_v5 }
 0x257   :  { %949 = vmatmul.bf16.vlgmr.msra.gmra.mxu3 %v776_v6 }
 0x258   :  { %v682_v7 = vpop.f32.mrf.mxu3 }
 0x259   :  { %v683_v9 = vadd.f32 %v1541_v37, %v682_v7 }
 0x25b   :  { %v747_v12 = vmax.f32 %v683_v9, 0.0 }
 0x25c   :  { %v912_v8 = vpop.f32.mrf.mxu2 }
 0x25d   :  { %1003 = vst [vmem:[#allocation2 + $0xb8] sm:$0xff] %v912_v8 }
 0x260   :  { %v684_v10 = vpop.f32.mrf.mxu3 }
 0x261   :  { %v685_v11 = vadd.f32 %v1541_v37, %v684_v10 }
 0x263   :  { %v748_v13 = vmax.f32 %v685_v11, 0.0 }
 0x264   :  { %v915_v14 = vpop.f32.mrf.mxu2 }
 0x265   :  { %v777_v15 = vpack.c.bf16 %v748_v13, %v747_v12  ;;  %1004 = vst [vmem:[#allocation2 + $0xc0] sm:$0xff] %v915_v14 }
 0x267   :  { %954 = vmatmul.bf16.gmra.mxu3 %v777_v15 }
 0x268   :  { %v687_v16 = vpop.f32.mrf.mxu3 }
 0x269   :  { %v688_v18 = vadd.f32 %v1541_v37, %v687_v16 }
 0x26b   :  { %v749_v22 = vmax.f32 %v688_v18, 0.0 }
 0x26c   :  { %v917_v17 = vpop.f32.mrf.mxu2 }
 0x26d   :  { %1005 = vst [vmem:[#allocation2 + $0xc8] sm:$0xff] %v917_v17 }
 0x270   :  { %v689_v19 = vpop.f32.mrf.mxu3 }
 0x271   :  { %v690_v21 = vadd.f32 %v1541_v37, %v689_v19 }
 0x273   :  { %v750_v23 = vmax.f32 %v690_v21, 0.0 }
 0x274   :  { %v920_v24 = vpop.f32.mrf.mxu2 }
 0x275   :  { %v778_v25 = vpack.c.bf16 %v750_v23, %v749_v22  ;;  %1006 = vst [vmem:[#allocation2 + $0xd0] sm:$0xff] %v920_v24 }
 0x277   :  { %959 = vmatmul.bf16.gmra.mxu3 %v778_v25 }
 0x278   :  { %v692_v26 = vpop.f32.mrf.mxu3 }
 0x279   :  { %v693_v28 = vadd.f32 %v1541_v37, %v692_v26 }
 0x27b   :  { %v751_v31 = vmax.f32 %v693_v28, 0.0 }
 0x27c   :  { %v922_v27 = vpop.f32.mrf.mxu2 }
 0x27d   :  { %1007 = vst [vmem:[#allocation2 + $0xd8] sm:$0xff] %v922_v27 }
 0x280   :  { %v694_v29 = vpop.f32.mrf.mxu3 }
 0x281   :  { %v695_v30 = vadd.f32 %v1541_v37, %v694_v29 }
 0x283   :  { %v752_v32 = vmax.f32 %v695_v30, 0.0 }
 0x284   :  { %v925_v33 = vpop.f32.mrf.mxu2 }
 0x285   :  { %v779_v34 = vpack.c.bf16 %v752_v32, %v751_v31  ;;  %1008 = vst [vmem:[#allocation2 + $0xe0] sm:$0xff] %v925_v33 }
 0x287   :  { %964 = vmatmul.bf16.gmra.mxu3 %v779_v34 }
 0x288   :  { %v697_v35 = vpop.f32.mrf.mxu3 }
 0x289   :  { %v698_v38 = vadd.f32 %v1541_v37, %v697_v35 }
 0x28b   :  { %v753_v40 = vmax.f32 %v698_v38, 0.0 }
 0x28c   :  { %v927_v36 = vpop.f32.mrf.mxu2 }
 0x28d   :  { %1009 = vst [vmem:[#allocation2 + $0xe8] sm:$0xff] %v927_v36 }
 0x290   :  { %v699_v20 = vpop.f32.mrf.mxu3 }
 0x291   :  { %v700_v39 = vadd.f32 %v1541_v37, %v699_v20 }
 0x293   :  { %v754_v41 = vmax.f32 %v700_v39, 0.0 }
 0x294   :  { %v930_v42 = vpop.f32.mrf.mxu2 }
 0x295   :  { %v780_v43 = vpack.c.bf16 %v754_v41, %v753_v40  ;;  %1010 = vst [vmem:[#allocation2 + $0xf0] sm:$0xff] %v930_v42 }
 0x297   :  { %969 = vmatmul.bf16.gmra.mxu3 %v780_v43 }
 0x298   :  { %v702_v44 = vpop.f32.mrf.mxu3 }
 0x299   :  { %v703_v46 = vadd.f32 %v1541_v37, %v702_v44 }
 0x29b   :  { %v755_v49 = vmax.f32 %v703_v46, 0.0 }
 0x29c   :  { %v932_v45 = vpop.f32.mrf.mxu2 }
 0x29d   :  { %1011 = vst [vmem:[#allocation2 + $0xf8] sm:$0xff] %v932_v45 }
 0x2a0   :  { %v704_v47 = vpop.f32.mrf.mxu3 }
 0x2a1   :  { %v705_v48 = vadd.f32 %v1541_v37, %v704_v47 }
 0x2a3   :  { %v756_v50 = vmax.f32 %v705_v48, 0.0 }
 0x2a4   :  { %v935_v51 = vpop.f32.mrf.mxu2 }
 0x2a5   :  { %v781_v52 = vpack.c.bf16 %v756_v50, %v755_v49  ;;  %1012 = vst [vmem:[#allocation2 + $0x100] sm:$0xff] %v935_v51 }
 0x2a7   :  { %974 = vmatmul.bf16.gmra.mxu3 %v781_v52 }
 0x2ac   :  { %v937_v53 = vpop.f32.mrf.mxu2 }
 0x2ad   :  { %1013 = vst [vmem:[#allocation2 + $0x108] sm:$0xff] %v937_v53 }
 0x2b4   :  { %v940_v54 = vpop.f32.mrf.mxu2 }
 0x2b5   :  { %1014 = vst [vmem:[#allocation2 + $0x110] sm:$0xff] %v940_v54 }
 0x2bc   :  { %v942_v55 = vpop.f32.mrf.mxu2 }
 0x2bd   :  { %1015 = vst [vmem:[#allocation2 + $0x118] sm:$0xff] %v942_v55 }
 0x2c4   :  { %v945_v56 = vpop.f32.mrf.mxu2 }
 0x2c5   :  { %1016 = vst [vmem:[#allocation2 + $0x120] sm:$0xff] %v945_v56 }
 0x2cc   :  { %v947_v57 = vpop.f32.mrf.mxu2 }
 0x2cd   :  { %1017 = vst [vmem:[#allocation2 + $0x128] sm:$0xff] %v947_v57 }
 0x2da   :  { %v950_v58 = vpop.f32.mrf.mxu3 }
 0x2db   :  { %1018 = vst [vmem:[#allocation2 + $0x130] sm:$0xff] %v950_v58 }
 0x2e2   :  { %v952_v59 = vpop.f32.mrf.mxu3 }
 0x2e3   :  { %1019 = vst [vmem:[#allocation2 + $0x138] sm:$0xff] %v952_v59 }
 0x2ea   :  { %v955_v37 = vpop.f32.mrf.mxu3 }
 0x2eb   :  { %1020 = vst [vmem:[#allocation2 + $0x140] sm:$0xff] %v955_v37 }
 0x2f2   :  { %v957_v60 = vpop.f32.mrf.mxu3 }
 0x2f3   :  { %1021 = vst [vmem:[#allocation2 + $0x148] sm:$0xff] %v957_v60 }
 0x2fa   :  { %v960_v61 = vpop.f32.mrf.mxu3 }
 0x2fb   :  { %1022 = vst [vmem:[#allocation2 + $0x150] sm:$0xff] %v960_v61 }
 0x302   :  { %v962_v62 = vpop.f32.mrf.mxu3 }
 0x303   :  { %1023 = vst [vmem:[#allocation2 + $0x158] sm:$0xff] %v962_v62 }
 0x30a   :  { %v965_v63 = vpop.f32.mrf.mxu3 }
 0x30b   :  { %1024 = vst [vmem:[#allocation2 + $0x160] sm:$0xff] %v965_v63 }
 0x312   :  { %v967_v0 = vpop.f32.mrf.mxu3 }
 0x313   :  { %1025 = vst [vmem:[#allocation2 + $0x168] sm:$0xff] %v967_v0 }
 0x31a   :  { %v970_v1 = vpop.f32.mrf.mxu3 }
 0x31b   :  { %1026 = vst [vmem:[#allocation2 + $0x170] sm:$0xff] %v970_v1 }
 0x322   :  { %v972_v2 = vpop.f32.mrf.mxu3 }
 0x323   :  { %1027 = vst [vmem:[#allocation2 + $0x178] sm:$0xff] %v972_v2 }
 0x32a   :  { %v975_v3 = vpop.f32.mrf.mxu3 }
 0x32b   :  { %1028 = vst [vmem:[#allocation2 + $0x180] sm:$0xff] %v975_v3 }
 0x332   :  { %v977_v4 = vpop.f32.mrf.mxu3 }
 0x333   :  { %1029 = vst [vmem:[#allocation2 + $0x188] sm:$0xff] %v977_v4 }
 0x334   :  { %1042 = dma.vmem_to_hbm [thread:$0]  %s1035_s30, 6400, %s1037_s8, [#allocation3], %s1338_s9, %s1338_s9, %s1339_s10  }
 0x335   :  { %1335 = dma.done.wait [#allocation3], 6400  }
 0x336   :  { %1336 = vsyncadd [#allocation3], 4294960896 }
 0x337   :  { %1047 = vsyncpa [#allocation3], 1 }

</bundles_post_ra>
